<compile_context>
chip_gen: v5e
topology: v5e:2x2
jax: 0.10.0
libtpu: 0.0.40
codegen_flags: <defaults>
</compile_context>

<pallas_src>
import math
import functools

import jax
import jax.numpy as jnp
import numpy as np
from jax.experimental import pallas as pl
from jax.experimental.pallas import tpu as pltpu


def _head_kernel(x_ref, wqkv_ref, b_ref, wo_ref, mask_ref, o_ref, *, blk, S, H):
    """One grid step: BLK slabs of shape (S, E) -> (S, H)."""
    cdt = x_ref.dtype                      # MXU operand dtype (f32 or bf16)
    x = x_ref[...]                         # (blk*S, E)

    # Fused QKV projection; attention scale already folded into the Q columns.
    qkv = jnp.dot(x, wqkv_ref[...], preferred_element_type=jnp.float32)   # (blk*S, 3H) f32
    qkv = qkv + b_ref[:, : 3 * H]

    q = qkv[:, :H].reshape(blk, S, H).astype(cdt)
    k = qkv[:, H: 2 * H].reshape(blk, S, H).astype(cdt)
    v = qkv[:, 2 * H:].reshape(blk, S, H).astype(cdt)

    # Attention logits (f32) + additive mask (0 / -1e7).
    w = jnp.einsum("bqh,bkh->bqk", q, k, preferred_element_type=jnp.float32)  # (blk, S, S)
    w = w + mask_ref[...][None, :, :]

    # Numerically stable softmax in f32; reciprocal on the EUP.
    w_max = jnp.max(w, axis=-1, keepdims=True)
    w_exp = jnp.exp(w - w_max)
    denom = jnp.sum(w_exp, axis=-1, keepdims=True)
    p = w_exp * pl.reciprocal(denom, approx=True)

    # dropout: identity (eval mode)

    out = jnp.einsum("bqk,bkh->bqh", p.astype(cdt), v,
                     preferred_element_type=jnp.float32)                  # (blk, S, H) f32
    out = out.reshape(blk * S, H).astype(cdt)
    out = jnp.dot(out, wo_ref[...], preferred_element_type=jnp.float32) + b_ref[:, 3 * H:]

    o_ref[...] = out.astype(o_ref.dtype)


def head_forward(x, params, mask, *, compute_dtype=jnp.float32, target_rows=512):
    """x: (B, T, S, E) float32; mask: (S, S) bool (True -> masked)."""
    B, T, S, E = x.shape
    wk, bk, wq, bq, wv, bv, wo, bo = params
    H = wk.shape[0]
    BT = B * T
    scale = 1.0 / math.sqrt(E)   # PyTorch divides by sqrt(x.shape[-1]) == sqrt(n_embd)

    # --- trace-time weight packing (one-time XLA ops, not per grid step) ---
    wqkv_t = jnp.concatenate([wq.T * scale, wk.T, wv.T], axis=1)           # (E, 3H)
    bias_all = jnp.concatenate([bq * scale, bk, bv, bo], axis=0)           # (4H,)
    bias_all = bias_all.astype(jnp.float32).reshape(1, 4 * H)
    wo_t = wo.T                                                            # (H, H)
    mask_add = jnp.where(mask, jnp.float32(-10000000.0), jnp.float32(0.0))  # (S, S) additive

    # --- block sizing: big tiles, but keep >= 2 grid steps for the 2 TCs on v7x ---
    blk = max(1, min(target_rows // S, BT))
    if BT >= 2:
        blk = min(blk, pl.cdiv(BT, 2))
    grid = pl.cdiv(BT, blk)
    BT_pad = grid * blk
    rows = blk * S

    x2d = x.reshape(BT * S, E)
    if BT_pad != BT:
        x2d = jnp.pad(x2d, ((0, (BT_pad - BT) * S), (0, 0)))
    x2d = x2d.astype(compute_dtype)
    wqkv_t = wqkv_t.astype(compute_dtype)
    wo_t = wo_t.astype(compute_dtype)

    # Explicit VMEM budget: double-buffered in/out blocks + resident weights + headroom.
    itm = jnp.dtype(compute_dtype).itemsize
    block_bytes = rows * (E * itm + H * 4)
    weight_bytes = (E * 3 * H + H * H) * itm + 4 * H * 4 + S * S * 4
    scratch_bytes = rows * 3 * H * 4 + blk * S * S * 4          # qkv + logits working set
    vmem_limit = int(min(64 << 20,
                         max(32 << 20, 4 * block_bytes + 2 * weight_bytes + 2 * scratch_bytes)))

    kernel = functools.partial(_head_kernel, blk=blk, S=S, H=H)

    out2d = pl.pallas_call(
        kernel,
        out_shape=jax.ShapeDtypeStruct((BT_pad * S, H), jnp.float32),
        grid_spec=pltpu.PrefetchScalarGridSpec(
            num_scalar_prefetch=0,
            grid=(grid,),
            in_specs=[
                pl.BlockSpec((rows, E), lambda i: (i, 0)),      # x slab (BLK*S, E)
                pl.BlockSpec((E, 3 * H), lambda i: (0, 0)),     # fused Wqkv (pre-transposed)
                pl.BlockSpec((1, 4 * H), lambda i: (0, 0)),     # fused biases
                pl.BlockSpec((H, H), lambda i: (0, 0)),         # Wo (pre-transposed)
                pl.BlockSpec((S, S), lambda i: (0, 0)),         # additive mask
            ],
            out_specs=pl.BlockSpec((rows, H), lambda i: (i, 0)),
        ),
        compiler_params=pltpu.CompilerParams(
            dimension_semantics=("parallel",),
            vmem_limit_bytes=vmem_limit),
    )(x2d, wqkv_t, bias_all, wo_t, mask_add)

    return out2d[: BT * S].reshape(B, T, S, H)


def head_reference(x, params, mask):
    """Pure-JAX reference mirroring the PyTorch forward (eval mode)."""
    wk, bk, wq, bq, wv, bv, wo, bo = params
    E = x.shape[-1]
    k = x @ wk.T + bk
    q = x @ wq.T + bq
    v = x @ wv.T + bv
    w = jnp.einsum("btqe,btke->btqk", q, k) / math.sqrt(E)
    w = jnp.where(mask[None, None], -10000000.0, w)
    w = jax.nn.softmax(w, axis=-1)
    out = jnp.einsum("btqk,btkh->btqh", w, v)
    return out @ wo.T + bo


def init_params(key, n_embd, head_size):
    """Deterministic init matching nn.Linear default (uniform +-1/sqrt(fan_in))."""
    ks = jax.random.split(key, 8)

    def lin(kw, kb, fan_in, fan_out):
        bound = 1.0 / math.sqrt(fan_in)
        w = jax.random.uniform(kw, (fan_out, fan_in), jnp.float32, -bound, bound)
        b = jax.random.uniform(kb, (fan_out,), jnp.float32, -bound, bound)
        return w, b

    wk, bk = lin(ks[0], ks[1], n_embd, head_size)
    wq, bq = lin(ks[2], ks[3], n_embd, head_size)
    wv, bv = lin(ks[4], ks[5], n_embd, head_size)
    wo, bo = lin(ks[6], ks[7], head_size, head_size)
    return (wk, bk, wq, bq, wv, bv, wo, bo)


if __name__ == "__main__":
    B, T, S, E, H = 2, 8, 8, 32, 16   # batch, trajectory, sequence, n_embd, head_size

    key = jax.random.PRNGKey(0)
    kx, kp = jax.random.split(key)
    x = jax.random.normal(kx, (B, T, S, E), dtype=jnp.float32)
    params = init_params(kp, n_embd=E, head_size=H)

    # causal-style boolean mask: True above the diagonal (positions to mask out)
    mask = jnp.triu(jnp.ones((S, S), dtype=bool), k=1)

    ref = head_reference(x, params, mask)

    # f32 MXU path (all generations)
    out_f32 = jax.block_until_ready(head_forward(x, params, mask))
    np.testing.assert_allclose(np.asarray(out_f32), np.asarray(ref), rtol=2e-3, atol=2e-3)

    # bf16 MXU-operand / f32-accumulate path (v6e / v7x fast path)
    out_bf16 = jax.block_until_ready(
        head_forward(x, params, mask, compute_dtype=jnp.bfloat16))
    np.testing.assert_allclose(np.asarray(out_bf16), np.asarray(ref), rtol=2e-2, atol=2e-2)

    print("KERNEL_OK")
</pallas_src>

<mosaic_0001>
module attributes {stable_mosaic.version = 11 : i64} {
  func.func @_head_kernel(%arg0: i32, %arg1: memref<64x32xf32, #tpu.memory_space<vmem>>, %arg2: memref<32x48xf32, #tpu.memory_space<vmem>>, %arg3: memref<1x64xf32, #tpu.memory_space<vmem>>, %arg4: memref<16x16xf32, #tpu.memory_space<vmem>>, %arg5: memref<8x8xf32, #tpu.memory_space<vmem>>, %arg6: memref<64x16xf32, #tpu.memory_space<vmem>>) attributes {dimension_semantics = [#tpu.dimension_semantics<parallel>], iteration_bounds = array<i64: 2>, scalar_prefetch = 0 : i64, scratch_operands = 0 : i64, tpu.core_type = #tpu.core_type<tc>, window_params = [{transform_indices = @transform_0, window_bounds = array<i64: 64, 32>}, {pipeline_mode = #tpu.pipeline_mode<synchronous>, transform_indices = @transform_1, window_bounds = array<i64: 32, 48>}, {pipeline_mode = #tpu.pipeline_mode<synchronous>, transform_indices = @transform_2, window_bounds = array<i64: 1, 64>}, {pipeline_mode = #tpu.pipeline_mode<synchronous>, transform_indices = @transform_3, window_bounds = array<i64: 16, 16>}, {pipeline_mode = #tpu.pipeline_mode<synchronous>, transform_indices = @transform_4, window_bounds = array<i64: 8, 8>}, {transform_indices = @transform_5, window_bounds = array<i64: 64, 16>}]} {
    %c0 = arith.constant 0 : index
    %c0_0 = arith.constant 0 : index
    %0 = vector.load %arg1[%c0, %c0_0] : memref<64x32xf32, #tpu.memory_space<vmem>>, vector<64x32xf32>
    %c0_1 = arith.constant 0 : index
    %c0_2 = arith.constant 0 : index
    %1 = vector.load %arg2[%c0_1, %c0_2] : memref<32x48xf32, #tpu.memory_space<vmem>>, vector<32x48xf32>
    %cst = arith.constant dense<0.000000e+00> : vector<64x48xf32>
    %2 = tpu.matmul %0, %1, %cst {dimension_numbers = #tpu.dot_dimension_numbers<[1], [0], [0], [1], [0, 0, 1, 1], [], []>} : vector<64x32xf32>, vector<32x48xf32>, vector<64x48xf32> -> vector<64x48xf32>
    %c0_3 = arith.constant 0 : index
    %c0_4 = arith.constant 0 : index
    %3 = vector.load %arg3[%c0_3, %c0_4] : memref<1x64xf32, #tpu.memory_space<vmem>>, vector<1x48xf32>
    %4 = vector.broadcast %3 : vector<1x48xf32> to vector<64x48xf32>
    %5 = arith.addf %2, %4 : vector<64x48xf32>
    %6 = vector.extract_strided_slice %5 {offsets = [0, 0], sizes = [64, 16], strides = [1, 1]} : vector<64x48xf32> to vector<64x16xf32>
    %7 = vector.shape_cast %6 : vector<64x16xf32> to vector<8x8x16xf32>
    %8 = vector.extract_strided_slice %5 {offsets = [0, 16], sizes = [64, 16], strides = [1, 1]} : vector<64x48xf32> to vector<64x16xf32>
    %9 = vector.shape_cast %8 : vector<64x16xf32> to vector<8x8x16xf32>
    %10 = vector.extract_strided_slice %5 {offsets = [0, 32], sizes = [64, 16], strides = [1, 1]} : vector<64x48xf32> to vector<64x16xf32>
    %11 = vector.shape_cast %10 : vector<64x16xf32> to vector<8x8x16xf32>
    "tpu.trace_start"() <{level = 10 : i32, message = "bqh,bkh->bqk"}> : () -> ()
    %cst_5 = arith.constant dense<0.000000e+00> : vector<8x8x8xf32>
    %12 = tpu.matmul %7, %9, %cst_5 {dimension_numbers = #tpu.dot_dimension_numbers<[2], [2], [1], [1], [0, 0, 0, 1, 1, 1], [0], [0]>} : vector<8x8x16xf32>, vector<8x8x16xf32>, vector<8x8x8xf32> -> vector<8x8x8xf32>
    "tpu.trace_stop"() : () -> ()
    %c0_6 = arith.constant 0 : index
    %c0_7 = arith.constant 0 : index
    %13 = vector.load %arg5[%c0_6, %c0_7] : memref<8x8xf32, #tpu.memory_space<vmem>>, vector<8x8xf32>
    %14 = vector.shape_cast %13 : vector<8x8xf32> to vector<1x8x8xf32>
    %15 = vector.broadcast %14 : vector<1x8x8xf32> to vector<8x8x8xf32>
    %16 = arith.addf %12, %15 : vector<8x8x8xf32>
    %cst_8 = arith.constant dense<0xFF800000> : vector<8x8xf32>
    %17 = vector.multi_reduction <maximumf>, %16, %cst_8 [2] : vector<8x8x8xf32> to vector<8x8xf32>
    %18 = vector.shape_cast %17 : vector<8x8xf32> to vector<8x8x1xf32>
    %19 = vector.broadcast %18 : vector<8x8x1xf32> to vector<8x8x8xf32>
    %20 = arith.subf %16, %19 : vector<8x8x8xf32>
    %21 = math.exp %20 : vector<8x8x8xf32>
    %cst_9 = arith.constant dense<0.000000e+00> : vector<8x8xf32>
    %22 = vector.multi_reduction <add>, %21, %cst_9 [2] : vector<8x8x8xf32> to vector<8x8xf32>
    %23 = vector.shape_cast %22 : vector<8x8xf32> to vector<8x8x1xf32>
    %24 = tpu.reciprocal %23 {approx = true} : vector<8x8x1xf32> -> vector<8x8x1xf32>
    %25 = vector.broadcast %24 : vector<8x8x1xf32> to vector<8x8x8xf32>
    %26 = arith.mulf %21, %25 : vector<8x8x8xf32>
    "tpu.trace_start"() <{level = 10 : i32, message = "bqk,bkh->bqh"}> : () -> ()
    %cst_10 = arith.constant dense<0.000000e+00> : vector<8x8x16xf32>
    %27 = tpu.matmul %26, %11, %cst_10 {dimension_numbers = #tpu.dot_dimension_numbers<[2], [1], [1], [2], [0, 0, 0, 1, 1, 2], [0], [0]>} : vector<8x8x8xf32>, vector<8x8x16xf32>, vector<8x8x16xf32> -> vector<8x8x16xf32>
    "tpu.trace_stop"() : () -> ()
    %28 = vector.shape_cast %27 : vector<8x8x16xf32> to vector<64x16xf32>
    %c0_11 = arith.constant 0 : index
    %c0_12 = arith.constant 0 : index
    %29 = vector.load %arg4[%c0_11, %c0_12] : memref<16x16xf32, #tpu.memory_space<vmem>>, vector<16x16xf32>
    %cst_13 = arith.constant dense<0.000000e+00> : vector<64x16xf32>
    %30 = tpu.matmul %28, %29, %cst_13 {dimension_numbers = #tpu.dot_dimension_numbers<[1], [0], [0], [1], [0, 0, 1, 1], [], []>} : vector<64x16xf32>, vector<16x16xf32>, vector<64x16xf32> -> vector<64x16xf32>
    %c0_14 = arith.constant 0 : index
    %c48 = arith.constant 48 : index
    %31 = vector.load %arg3[%c0_14, %c48] : memref<1x64xf32, #tpu.memory_space<vmem>>, vector<1x16xf32>
    %32 = vector.broadcast %31 : vector<1x16xf32> to vector<64x16xf32>
    %33 = arith.addf %30, %32 : vector<64x16xf32>
    %c0_15 = arith.constant 0 : index
    %c0_16 = arith.constant 0 : index
    %34 = vector.load %arg6[%c0_15, %c0_16] : memref<64x16xf32, #tpu.memory_space<vmem>>, vector<64x16xf32>
    tpu.vector_store %arg6[%c0_15, %c0_16], %33 {strides = array<i32>} : memref<64x16xf32, #tpu.memory_space<vmem>>, vector<64x16xf32>,
    return
  }
  func.func @transform_0(%arg0: i32) -> (i32, i32) {
    %c0_i32 = arith.constant 0 : i32
    %c0_i32_0 = arith.constant 0 : i32
    return %arg0, %c0_i32 : i32, i32
  }
  func.func @transform_1(%arg0: i32) -> (i32, i32) {
    %c0_i32 = arith.constant 0 : i32
    %c0_i32_0 = arith.constant 0 : i32
    %c0_i32_1 = arith.constant 0 : i32
    return %c0_i32, %c0_i32_0 : i32, i32
  }
  func.func @transform_2(%arg0: i32) -> (i32, i32) {
    %c0_i32 = arith.constant 0 : i32
    %c0_i32_0 = arith.constant 0 : i32
    %c0_i32_1 = arith.constant 0 : i32
    return %c0_i32, %c0_i32_0 : i32, i32
  }
  func.func @transform_3(%arg0: i32) -> (i32, i32) {
    %c0_i32 = arith.constant 0 : i32
    %c0_i32_0 = arith.constant 0 : i32
    %c0_i32_1 = arith.constant 0 : i32
    return %c0_i32, %c0_i32_0 : i32, i32
  }
  func.func @transform_4(%arg0: i32) -> (i32, i32) {
    %c0_i32 = arith.constant 0 : i32
    %c0_i32_0 = arith.constant 0 : i32
    %c0_i32_1 = arith.constant 0 : i32
    return %c0_i32, %c0_i32_0 : i32, i32
  }
  func.func @transform_5(%arg0: i32) -> (i32, i32) {
    %c0_i32 = arith.constant 0 : i32
    %c0_i32_0 = arith.constant 0 : i32
    return %arg0, %c0_i32 : i32, i32
  }
}

</mosaic_0001>

<bundles_post_ra>
// kernel: tpu_custom_call.1
= control target key start
LH: loop header
LB: loop body
LE: loop exit
PB: predicated region body
PF: predicated region fallthrough
CT: control target
= control target key end

     0   :  { %s1116_s18 = smov 0   ;;  %s1278_s0 = inlined_call_operand.vmem [shape: f32[128,32], index: 0, kind: input, shape index: {}]   ;;  %s1279_s1 = inlined_call_operand.vmem [shape: f32[32,48], index: 1, kind: input, shape index: {}]   ;;  %s1280_s2 = inlined_call_operand.vmem [shape: f32[1,64], index: 2, kind: input, shape index: {}]   ;;  %s1281_s3 = inlined_call_operand.vmem [shape: f32[16,16], index: 3, kind: input, shape index: {}]   ;;  %s1282_s4 = inlined_call_operand.vmem [shape: f32[8,8], index: 4, kind: input, shape index: {}]   ;;  %s1283_s5 = inlined_call_operand.vmem [shape: f32[128,16], index: 5, kind: output, shape index: {}]  }
   0x1 LB: > { %s962_s19 = sadd.s32 4294967295, %s1081_s18   ;;  %p966_p0 = scmp.ge.s32.totalorder %s1081_s18, 1  ;;  %s1081_s18 = sphi %s1116_s18, %s15_s18  }
   0x2   : > { %p188_p1 = scmp.lt.s32.totalorder %s1081_s18, 3 }
   0x4   : > { %p189_p2 = pnand %p966_p0, %p188_p1 }
   0x5   : > { %s967_s24 = sshll.u32 (!%p189_p2), %s962_s19, 3  ;;  %s1083_s10 = smov (!%p189_p2), 112  }
   0x6   : > { %192 = sbr.rel (%p189_p2) target bundleno = 997 (0x3e5), region = 40  ;;  %p217_p3 = scmp.lt.s32.totalorder (!%p189_p2), %s967_s24, 15 }
   0x7   : > { %s1084_s11 = smov (!%p189_p2), 96   ;;  %s1085_s21 = smov (!%p189_p2), 80  }
   0xb   : > { %v239_v0 = vld [vmem:[%s1279_s1 + $0x18] sm:$0xff]  ;;  %v238_v1 = vld [vmem:[%s1279_s1 + $0x10] sm:$0xff]  ;;  %v237_v2 = vld [vmem:[%s1279_s1 + $0x8] sm:$0xff]  ;;  %s1285_s24 = smov (!%p217_p3, %s967_s24), 15  ;;  %vm244_vm0 = vcmask 261120   ;;  %vm314_vm1 = vcmask 130048  }
   0xc   : > { %281 = vmatpush.msra.mxu0 %v239_v0  ;;  %v236_v3 = vld [vmem:[%s1279_s1] sm:$0xff]  ;;  %s968_s29 = sshll.u32 %s1285_s24, 3  ;;  %vm528_vm2 = vcmask 64512  }
   0xd   : > { %s220_s7 = scalar_lea.vmem %s1278_s0, %s968_s29  ;;  %v1041_v12 = vld [vmem:[%s1280_s2] ss:$0 sm:$0xff]  ;;  %s226_s25 = scalar_lea.vmem %s1283_s5, %s968_s29 }
   0xe   : > { %282 = vmatpush.msra.mxu0 %v238_v1  ;;  %v228_v4 = vld [vmem:[%s220_s7] sm:$0xff]  ;;  %v229_v5 = vld [vmem:[%s220_s7 + $0x8] sm:$0xff]  ;;  %v230_v6 = vld [vmem:[%s220_s7 + $0x10] sm:$0xff] }
   0xf   : > { %v231_v7 = vld [vmem:[%s220_s7 + $0x18] sm:$0xff]  ;;  %v232_v8 = vld [vmem:[%s220_s7 + $0x20] sm:$0xff]  ;;  %v233_v9 = vld [vmem:[%s220_s7 + $0x28] sm:$0xff] }
  0x10   : > { %283 = vmatpush.msra.mxu0 %v237_v2  ;;  %v234_v10 = vld [vmem:[%s220_s7 + $0x30] sm:$0xff]  ;;  %v235_v11 = vld [vmem:[%s220_s7 + $0x38] sm:$0xff]  ;;  %v310_v41 = vld [vmem:[%s1282_s4] sm:$0xff] }
  0x12   : > { %284 = vmatpush.msra.mxu0 %v236_v3 }
  0x13   : > { %971 = vmatmul.msk.f32.vlgmr.msra.gmra.mxu0 %vm244_vm0, %v228_v4 }
  0x1b   : > { %972 = vmatmul.msk.f32.gmra.mxu0 %vm244_vm0, %v229_v5 }
  0x23   : > { %973 = vmatmul.msk.f32.gmra.mxu0 %vm244_vm0, %v230_v6 }
  0x2b   : > { %974 = vmatmul.msk.f32.gmra.mxu0 %vm244_vm0, %v231_v7 }
  0x33   : > { %975 = vmatmul.msk.f32.gmra.mxu0 %vm244_vm0, %v232_v8 }
  0x3b   : > { %976 = vmatmul.msk.f32.gmra.mxu0 %vm244_vm0, %v233_v9 }
  0x43   : > { %977 = vmatmul.msk.f32.gmra.mxu0 %vm244_vm0, %v234_v10 }
  0x4b   : > { %978 = vmatmul.msk.f32.gmra.mxu0 %vm244_vm0, %v235_v11 }
  0x90   : > { %v286_v13 = vpop.f32.mrf.mxu0 }
  0x91   : > { %v287_v14 = vadd.f32 %v1041_v12, %v286_v13 }
  0x93   : > { %312 = vrot.lane.b32.xlu0 %v287_v14, %s1083_s10 }
  0x98   : > { %v289_v15 = vpop.f32.mrf.mxu0 }
  0x99   : > { %v290_v16 = vadd.f32 %v1041_v12, %v289_v15 }
  0x9b   : > { %340 = vrot.lane.b32.xlu0 %v290_v16, %s1083_s10  ;;  %v1026_v29 = vpack.i.bf16 %v287_v14, %v290_v16 }
  0xa0   : > { %v292_v17 = vpop.f32.mrf.mxu0 }
  0xa1   : > { %v1155_v18 = vadd.f32 %v1041_v12, %v292_v17 }
  0xa3   : > { %367 = vrot.lane.b32.xlu1 %v1155_v18, %s1083_s10 }
  0xa8   : > { %v295_v19 = vpop.f32.mrf.mxu0 }
  0xa9   : > { %v1164_v25 = vadd.f32 %v1041_v12, %v295_v19 }
  0xb0   : > { %v298_v20 = vpop.f32.mrf.mxu0 }
  0xb1   : > { %v1158_v21 = vadd.f32 %v1041_v12, %v298_v20 }
  0xb3   : > { %421 = vrot.lane.b32.xlu1 %v1158_v21, %s1083_s10  ;;  %v1031_v2 = vpack.i.bf16 %v1158_v21, %v1155_v18 }
  0xb8   : > { %v301_v22 = vpop.f32.mrf.mxu0 }
  0xb9   : > { %v1161_v23 = vadd.f32 %v1041_v12, %v301_v22 }
  0xbb   : > { %448 = vrot.lane.b32.xlu2 %v1161_v23, %s1083_s10 }
  0xc0   : > { %v304_v24 = vpop.f32.mrf.mxu0 }
  0xc1   : > { %v1166_v26 = vadd.f32 %v1041_v12, %v304_v24 }
  0xc3   : > { %394 = vrot.lane.b32.xlu2 %v1164_v25, %s1083_s10  ;;  %475 = vrot.lane.b32.xlu0 %v1166_v26, %s1083_s10 }
  0xc8   : > { %v307_v27 = vpop.f32.mrf.mxu0 }
  0xc9   : > { %v1170_v28 = vadd.f32 %v1041_v12, %v307_v27 }
  0xcb   : > { %502 = vrot.lane.b32.xlu1 %v1170_v28, %s1083_s10 }
  0xd3   : > { %1027 = vrot.lane.b32.xlu1 %v1026_v29, %s1084_s11 }
 0x105   : > { %v313_v30 = vpop.permute.xlu0 %312 }
 0x106   : > { %979 = vmatpush.xpose.msk.msra.mxu1 %vm314_vm1, %v313_v30 }
 0x109   : > { %980 = vmatmul.msk.f32.vlgmr.msra.gmra.mxu1 %vm314_vm1, %v287_v14 }
 0x10d   : > { %v341_v31 = vpop.permute.xlu0 %340 }
 0x10e   : > { %981 = vmatpush.xpose.msk.msrb.mxu1 %vm314_vm1, %v341_v31 }
 0x111   : > { %982 = vmatmul.msk.f32.vlgmr.msrb.gmra.mxu1 %vm314_vm1, %v290_v16 }
 0x115   : > { %v449_v32 = vpop.permute.xlu2 %448  ;;  %v368_v33 = vpop.permute.xlu1 %367 }
 0x116   : > { %983 = vmatpush.xpose.msk.msra.mxu1 %vm314_vm1, %v368_v33  ;;  %989 = vmatpush.xpose.msk.msra.mxu3 %vm314_vm1, %v449_v32 }
 0x119   : > { %984 = vmatmul.msk.f32.vlgmr.msra.gmra.mxu1 %vm314_vm1, %v1155_v18  ;;  %990 = vmatmul.msk.f32.vlgmr.msra.gmra.mxu3 %vm314_vm1, %v1161_v23 }
 0x11d   : > { %v395_v34 = vpop.permute.xlu2 %394 }
 0x11e   : > { %985 = vmatpush.xpose.msk.msrb.mxu1 %vm314_vm1, %v395_v34 }
 0x121   : > { %986 = vmatmul.msk.f32.vlgmr.msrb.gmra.mxu1 %vm314_vm1, %v1164_v25 }
 0x125   : > { %v422_v35 = vpop.permute.xlu1 %421 }
 0x126   : > { %987 = vmatpush.xpose.msk.msra.mxu2 %vm314_vm1, %v422_v35 }
 0x129   : > { %988 = vmatmul.msk.f32.vlgmr.msra.gmra.mxu2 %vm314_vm1, %v1158_v21 }
 0x135   : > { %v476_v36 = vpop.permute.xlu0 %475 }
 0x136   : > { %991 = vmatpush.xpose.msk.msra.mxu1 %vm314_vm1, %v476_v36 }
 0x139   : > { %992 = vmatmul.msk.f32.vlgmr.msra.gmra.mxu1 %vm314_vm1, %v1166_v26 }
 0x13d   : > { %v503_v37 = vpop.permute.xlu1 %502 }
 0x13e   : > { %993 = vmatpush.xpose.msk.msrb.mxu2 %vm314_vm1, %v503_v37 }
 0x141   : > { %994 = vmatmul.msk.f32.vlgmr.msrb.gmra.mxu2 %vm314_vm1, %v1170_v28 }
 0x145   : > { %v1028_v38 = vpop.permute.xlu1 %1027 }
 0x146   : > { %v1029_v39 = vunpack.i.l.bf16 %v1028_v38  ;;  %v1030_v40 = vunpack.i.h.bf16 %v1028_v38 }
 0x148   : > { %638 = vmatpush.msrb.mxu3 %v1030_v40  ;;  %664 = vmatpush.msrb.mxu1 %v1029_v39 }
 0x186   : > { %v336_v42 = vpop.f32.mrf.mxu1 }
 0x187   : > { %v337_v43 = vadd.f32 %v336_v42, %v310_v41 }
 0x189   : > { %v529_v44 = vsel %vm528_vm2, %v337_v43, -inf }
 0x18a   : > { %530 = vmax.xlane.f32.xlu0 %v529_v44 }
 0x18e   : > { %v363_v45 = vpop.f32.mrf.mxu1 }
 0x18f   : > { %v364_v46 = vadd.f32 %v363_v45, %v310_v41 }
 0x191   : > { %v532_v47 = vsel %vm528_vm2, %v364_v46, -inf }
 0x192   : > { %533 = vmax.xlane.f32.xlu2 %v532_v47 }
 0x196   : > { %v390_v48 = vpop.f32.mrf.mxu1 }
 0x197   : > { %v391_v49 = vadd.f32 %v390_v48, %v310_v41 }
 0x199   : > { %v535_v50 = vsel %vm528_vm2, %v391_v49, -inf }
 0x19a   : > { %536 = vmax.xlane.f32.xlu1 %v535_v50 }
 0x19c   : > { %v471_v51 = vpop.f32.mrf.mxu3 }
 0x19d   : > { %v472_v52 = vadd.f32 %v471_v51, %v310_v41 }
 0x19e   : > { %v417_v53 = vpop.f32.mrf.mxu1 }
 0x19f   : > { %v418_v54 = vadd.f32 %v417_v53, %v310_v41  ;;  %v544_v55 = vsel %vm528_vm2, %v472_v52, -inf }
 0x1a0   : > { %545 = vmax.xlane.f32.xlu0 %v544_v55 }
 0x1a1   : > { %v538_v56 = vsel %vm528_vm2, %v418_v54, -inf }
 0x1a2   : > { %539 = vmax.xlane.f32.xlu2 %v538_v56 }
 0x1ac   : > { %v444_v57 = vpop.f32.mrf.mxu2 }
 0x1ad   : > { %v445_v58 = vadd.f32 %v444_v57, %v310_v41 }
 0x1af   : > { %v541_v59 = vsel %vm528_vm2, %v445_v58, -inf }
 0x1b0   : > { %542 = vmax.xlane.f32.xlu2 %v541_v59 }
 0x1b6   : > { %v498_v60 = vpop.f32.mrf.mxu1 }
 0x1b7   : > { %v499_v61 = vadd.f32 %v498_v60, %v310_v41 }
 0x1b9   : > { %v547_v62 = vsel %vm528_vm2, %v499_v61, -inf }
 0x1ba   : > { %548 = vmax.xlane.f32.xlu1 %v547_v62 }
 0x1c4   : > { %v525_v63 = vpop.f32.mrf.mxu2 }
 0x1c5   : > { %v526_v0 = vadd.f32 %v525_v63, %v310_v41 }
 0x1c7   : > { %v550_v1 = vsel %vm528_vm2, %v526_v0, -inf }
 0x1c8   : > { %551 = vmax.xlane.f32.xlu2 %v550_v1 }
 0x1e0   : > { %1032 = vrot.lane.b32.xlu2 %v1031_v2, %s1084_s11 }
 0x1fd   : > { %v531_v3 = vpop.xlane.xlu0 %530 }
 0x1fe   : > { %v553_v4 = vsub.f32 %v337_v43, %v531_v3 }
 0x200   : > { %v561_v5 = vmul.f32 1.442695, %v553_v4 }
 0x202   : > { %1043 = vpow2.f32 %v561_v5 }
 0x205   : > { %v534_v6 = vpop.xlane.xlu2 %533 }
 0x206   : > { %v554_v7 = vsub.f32 %v364_v46, %v534_v6 }
 0x208   : > { %v1210_v8 = vpop.eup %1043  ;;  %v563_v9 = vmul.f32 1.442695, %v554_v7 }
 0x209   : > { %v577_v10 = vsel %vm528_vm2, %v1210_v8, 0.0 }
 0x20a   : > { %1045 = vpow2.f32 %v563_v9  ;;  %578 = vadd.xlane.f32.xlu1 %v577_v10  ;;  %v826_v10 = vld [vmem:[%s1281_s3 + $0x8] sm:$0xff] }
 0x20d   : > { %v537_v11 = vpop.xlane.xlu1 %536 }
 0x20e   : > { %v555_v12 = vsub.f32 %v391_v49, %v537_v11 }
 0x210   : > { %v1046_v13 = vpop.eup %1045  ;;  %v565_v14 = vmul.f32 1.442695, %v555_v12 }
 0x211   : > { %v580_v15 = vsel %vm528_vm2, %v1046_v13, 0.0 }
 0x212   : > { %1047 = vpow2.f32 %v565_v14  ;;  %581 = vadd.xlane.f32.xlu0 %v580_v15  ;;  %v1042_v14 = vld [vmem:[%s1280_s2] ss:$0 sm:$0xff] }
 0x213   : > { %v546_v24 = vpop.xlane.xlu0 %545 }
 0x214   : > { %v558_v30 = vsub.f32 %v472_v52, %v546_v24 }
 0x215   : > { %v540_v16 = vpop.xlane.xlu2 %539 }
 0x216   : > { %v556_v17 = vsub.f32 %v418_v54, %v540_v16  ;;  %v571_v32 = vmul.f32 1.442695, %v558_v30 }
 0x218   : > { %v1048_v18 = vpop.eup %1047  ;;  %v567_v19 = vmul.f32 1.442695, %v556_v17 }
 0x219   : > { %v583_v20 = vsel %vm528_vm2, %v1048_v18, 0.0 }
 0x21a   : > { %1049 = vpow2.f32 %v567_v19  ;;  %584 = vadd.xlane.f32.xlu2 %v583_v20 }
 0x220   : > { %v1216_v21 = vpop.eup %1049 }
 0x221   : > { %v586_v22 = vsel %vm528_vm2, %v1216_v21, 0.0 }
 0x222   : > { %587 = vadd.xlane.f32.xlu2 %v586_v22 }
 0x223   : > { %v543_v27 = vpop.xlane.xlu2 %542  ;;  %773 = vrot.lane.b32.xlu1 %v1166_v26, %s1084_s11 }
 0x224   : > { %v557_v29 = vsub.f32 %v445_v58, %v543_v27 }
 0x226   : > { %v569_v31 = vmul.f32 1.442695, %v557_v29 }
 0x228   : > { %1051 = vpow2.f32 %v569_v31 }
 0x229   : > { %1053 = vpow2.f32 %v571_v32 }
 0x22d   : > { %v549_v33 = vpop.xlane.xlu1 %548 }
 0x22e   : > { %v1052_v34 = vpop.eup %1051  ;;  %v559_v35 = vsub.f32 %v499_v61, %v549_v33 }
 0x22f   : > { %v589_v36 = vsel %vm528_vm2, %v1052_v34, 0.0  ;;  %v1054_v38 = vpop.eup %1053 }
 0x230   : > { %590 = vadd.xlane.f32.xlu0 %v589_v36  ;;  %v573_v37 = vmul.f32 1.442695, %v559_v35  ;;  %v592_v39 = vsel %vm528_vm2, %v1054_v38, 0.0 }
 0x232   : > { %1055 = vpow2.f32 %v573_v37 }
 0x238   : > { %593 = vadd.xlane.f32.xlu0 %v592_v39  ;;  %v1226_v40 = vpop.eup %1055 }
 0x239   : > { %v595_v43 = vsel %vm528_vm2, %v1226_v40, 0.0 }
 0x23a   : > { %799 = vrot.lane.b32.xlu2 %v1170_v28, %s1084_s11  ;;  %v1036_v28 = vpack.i.bf16 %v1161_v23, %v1164_v25 }
 0x23b   : > { %v552_v26 = vpop.xlane.xlu2 %551 }
 0x23c   : > { %v560_v41 = vsub.f32 %v526_v0, %v552_v26 }
 0x23e   : > { %v575_v42 = vmul.f32 1.442695, %v560_v41 }
 0x240   : > { %596 = vadd.xlane.f32.xlu0 %v595_v43  ;;  %1057 = vpow2.f32 %v575_v42 }
 0x243   : > { %v1033_v44 = vpop.permute.xlu2 %1032 }
 0x244   : > { %v1035_v45 = vunpack.i.h.bf16 %v1033_v44  ;;  %v1034_v46 = vunpack.i.l.bf16 %v1033_v44 }
 0x246   : > { %690 = vmatpush.msra.mxu2 %v1034_v46  ;;  %742 = vmatpush.msra.mxu1 %v1035_v45  ;;  %v1058_v47 = vpop.eup %1057 }
 0x247   : > { %v598_v48 = vsel %vm528_vm2, %v1058_v47, 0.0 }
 0x24d   : > { %599 = vadd.xlane.f32.xlu1 %v598_v48 }
 0x254   : > { %1037 = vrot.lane.b32.xlu0 %v1036_v28, %s1084_s11 }
 0x25c   : > { %830 = vrot.lane.b32.xlu0 %v1042_v14, %s1085_s21 }
 0x27d   : > { %v579_v49 = vpop.xlane.xlu1 %578 }
 0x27e   : > { %1059 = vrcp.f32 %v579_v49 }
 0x284   : > { %v1060_v50 = vpop.eup %1059 }
 0x285   : > { %v582_v51 = vpop.xlane.xlu0 %581  ;;  %v609_v52 = vmul.f32 %v1060_v50, %v1210_v8 }
 0x286   : > { %1061 = vrcp.f32 %v582_v51 }
 0x287   : > { %995 = vmatmul.msk.f32.vlgmr.msrb.gmra.mxu3 %vm528_vm2, %v609_v52 }
 0x28c   : > { %v1062_v53 = vpop.eup %1061 }
 0x28d   : > { %v610_v54 = vmul.f32 %v1062_v53, %v1046_v13  ;;  %v585_v55 = vpop.xlane.xlu2 %584  ;;  %v825_v13 = vld [vmem:[%s1281_s3] sm:$0xff] }
 0x28e   : > { %1063 = vrcp.f32 %v585_v55 }
 0x28f   : > { %996 = vmatmul.msk.f32.vlgmr.msrb.gmra.mxu1 %vm528_vm2, %v610_v54 }
 0x294   : > { %v1064_v56 = vpop.eup %1063 }
 0x295   : > { %v611_v57 = vmul.f32 %v1064_v56, %v1048_v18  ;;  %v588_v23 = vpop.xlane.xlu2 %587  ;;  %v774_v62 = vpop.permute.xlu1 %773 }
 0x297   : > { %997 = vmatmul.msk.f32.vlgmr.msra.gmra.mxu2 %vm528_vm2, %v611_v57 }
 0x29d   : > { %v800_v25 = vpop.permute.xlu2 %799 }
 0x29e   : > { %820 = vmatpush.msrb.mxu1 %v800_v25 }
 0x2a3   : > { %v591_v58 = vpop.xlane.xlu0 %590 }
 0x2a4   : > { %1065 = vrcp.f32 %v591_v58 }
 0x2a5   : > { %1067 = vrcp.f32 %v588_v23 }
 0x2aa   : > { %v1066_v59 = vpop.eup %1065 }
 0x2ab   : > { %v613_v60 = vmul.f32 %v1066_v59, %v1052_v34  ;;  %v594_v61 = vpop.xlane.xlu0 %593  ;;  %v1068_v1 = vpop.eup %1067 }
 0x2ac   : > { %1069 = vrcp.f32 %v594_v61  ;;  %v612_v7 = vmul.f32 %v1068_v1, %v1216_v21 }
 0x2ad   : > { %999 = vmatmul.msk.f32.vlgmr.msra.gmra.mxu1 %vm528_vm2, %v613_v60 }
 0x2b2   : > { %v1070_v2 = vpop.eup %1069 }
 0x2b3   : > { %v597_v63 = vpop.xlane.xlu0 %596  ;;  %v614_v8 = vmul.f32 %v1070_v2, %v1054_v38 }
 0x2c0   : > { %v600_v0 = vpop.xlane.xlu1 %599 }
 0x2c1   : > { %1071 = vrcp.f32 %v600_v0 }
 0x2c2   : > { %1073 = vrcp.f32 %v597_v63 }
 0x2c6   : > { %v1038_v3 = vpop.permute.xlu0 %1037 }
 0x2c7   : > { %v1072_v4 = vpop.eup %1071  ;;  %v1040_v5 = vunpack.i.h.bf16 %v1038_v3  ;;  %v1039_v6 = vunpack.i.l.bf16 %v1038_v3 }
 0x2c8   : > { %v616_v9 = vmul.f32 %v1072_v4, %v1058_v47  ;;  %v1074_v11 = vpop.eup %1073 }
 0x2c9   : > { %716 = vmatpush.msra.mxu3 %v1039_v6  ;;  %768 = vmatpush.msrb.mxu2 %v1040_v5  ;;  %v615_v12 = vmul.f32 %v1074_v11, %v1226_v40 }
 0x2ca   : > { %998 = vmatmul.msk.f32.vlgmr.msra.gmra.mxu3 %vm528_vm2, %v612_v7  ;;  %1000 = vmatmul.msk.f32.vlgmr.msrb.gmra.mxu2 %vm528_vm2, %v614_v8 }
 0x2cb   : > { %794 = vmatpush.msrb.mxu3 %v774_v62  ;;  %1002 = vmatmul.msk.f32.vlgmr.msrb.gmra.mxu1 %vm528_vm2, %v616_v9 }
 0x2cc   : > { %871 = vmatpush.msra.mxu2 %v826_v10 }
 0x2cd   : > { %1013 = vmatpush.msra.mxu3 %v826_v10 }
 0x2ce   : > { %872 = vmatpush.msra.mxu2 %v825_v13  ;;  %v831_v24 = vpop.permute.xlu0 %830 }
 0x2cf   : > { %1014 = vmatpush.msra.mxu3 %v825_v13 }
 0x2d2   : > { %1001 = vmatmul.msk.f32.vlgmr.msrb.gmra.mxu3 %vm528_vm2, %v615_v12 }
 0x30a   : > { %v640_v15 = vpop.f32.mrf.mxu3 }
 0x30b   : > { %1003 = vmatmul.msk.f32.vlgmr.msra.gmra.mxu2 %vm314_vm1, %v640_v15 }
 0x30c   : > { %v666_v16 = vpop.f32.mrf.mxu1 }
 0x313   : > { %1004 = vmatmul.msk.f32.gmra.mxu2 %vm314_vm1, %v666_v16 }
 0x31a   : > { %v692_v17 = vpop.f32.mrf.mxu2 }
 0x31b   : > { %1005 = vmatmul.msk.f32.gmra.mxu2 %vm314_vm1, %v692_v17 }
 0x32a   : > { %v744_v18 = vpop.f32.mrf.mxu1 }
 0x32b   : > { %1007 = vmatmul.msk.f32.vlgmr.msra.gmra.mxu3 %vm314_vm1, %v744_v18 }
 0x348   : > { %v822_v22 = vpop.f32.mrf.mxu1 }
 0x34d   : > { %v718_v19 = vpop.f32.mrf.mxu3  ;;  %v770_v20 = vpop.f32.mrf.mxu2 }
 0x34e   : > { %1006 = vmatmul.msk.f32.gmra.mxu2 %vm314_vm1, %v718_v19  ;;  %1008 = vmatmul.msk.f32.gmra.mxu3 %vm314_vm1, %v770_v20 }
 0x355   : > { %v796_v21 = vpop.f32.mrf.mxu3 }
 0x356   : > { %1009 = vmatmul.msk.f32.gmra.mxu3 %vm314_vm1, %v796_v21 }
 0x35e   : > { %1010 = vmatmul.msk.f32.gmra.mxu3 %vm314_vm1, %v822_v22 }
 0x38e   : > { %v874_v27 = vpop.f32.mrf.mxu2 }
 0x38f   : > { %v875_v29 = vadd.f32 %v874_v27, %v831_v24 }
 0x391   : > { %898 = vst.msk [vmem:[%s226_s25] sm:$0xff] %vm314_vm1, %v875_v29 }
 0x396   : > { %v877_v30 = vpop.f32.mrf.mxu2 }
 0x397   : > { %v878_v31 = vadd.f32 %v877_v30, %v831_v24 }
 0x399   : > { %899 = vst.msk [vmem:[%s226_s25 + $0x8] sm:$0xff] %vm314_vm1, %v878_v31 }
 0x39e   : > { %v880_v32 = vpop.f32.mrf.mxu2 }
 0x39f   : > { %v881_v33 = vadd.f32 %v880_v32, %v831_v24 }
 0x3a1   : > { %900 = vst.msk [vmem:[%s226_s25 + $0x10] sm:$0xff] %vm314_vm1, %v881_v33 }
 0x3ae   : > { %v886_v34 = vpop.f32.mrf.mxu3 }
 0x3af   : > { %v887_v35 = vadd.f32 %v886_v34, %v831_v24 }
 0x3b1   : > { %902 = vst.msk [vmem:[%s226_s25 + $0x20] sm:$0xff] %vm314_vm1, %v887_v35 }
 0x3d1   : > { %v883_v36 = vpop.f32.mrf.mxu2  ;;  %v889_v37 = vpop.f32.mrf.mxu3 }
 0x3d2   : > { %v884_v38 = vadd.f32 %v883_v36, %v831_v24  ;;  %v890_v39 = vadd.f32 %v889_v37, %v831_v24 }
 0x3d4   : > { %901 = vst.msk [vmem:[%s226_s25 + $0x18] sm:$0xff] %vm314_vm1, %v884_v38 }
 0x3d5   : > { %903 = vst.msk [vmem:[%s226_s25 + $0x28] sm:$0xff] %vm314_vm1, %v890_v39 }
 0x3d9   : > { %v892_v26 = vpop.f32.mrf.mxu3 }
 0x3da   : > { %v893_v40 = vadd.f32 %v892_v26, %v831_v24 }
 0x3dc   : > { %904 = vst.msk [vmem:[%s226_s25 + $0x30] sm:$0xff] %vm314_vm1, %v893_v40 }
 0x3e1   : > { %v895_v41 = vpop.f32.mrf.mxu3 }
 0x3e2   : > { %v896_v42 = vadd.f32 %v895_v41, %v831_v24 }
 0x3e4   : > { %905 = vst.msk [vmem:[%s226_s25 + $0x38] sm:$0xff] %vm314_vm1, %v896_v42 }
 0x3e5 PF: > { %s15_s18 = sadd.s32 1, %s1081_s18  }
 0x3e6   : > { %p12_p4 = scmp.ge.s32.totalorder %s15_s18, 4  }
 0x3e8   :  { %14 = sbr.rel (!%p12_p4) target bundleno = 1 (0x1), region = 70 }

</bundles_post_ra>
